<compile_context>
chip_gen: v6e
topology: v6e:2x2x1
jax: 0.10.0
libtpu: 0.0.40
codegen_flags: <defaults>
</compile_context>

<pallas_src>
import math
from functools import partial

import jax
import jax.numpy as jnp
from jax.experimental import pallas as pl
from jax.experimental.pallas import tpu as pltpu


# ----------------------------- Pallas kernels ------------------------------ #

def _attn_block_kernel(x_ref, nw_ref, wq_ref, wk_ref, wv_ref, wp_ref,
                       rot_ref, cos_ref, sin_ref,
                       emat_ref, gmat_ref, hmask_ref, cmask_ref, o_ref,
                       *, head_dim):
    """Fused per-batch attention block: x + Wproj(Attn(RoPE(QKV(RMSNorm(x)))))."""
    x = x_ref[0]                                               # (S, D) f32
    # --- RMSNorm (f32) ---
    inv = jax.lax.rsqrt(jnp.mean(x * x, axis=-1, keepdims=True) + 1e-6)
    h = (x * inv) * nw_ref[...]
    hb = h.astype(jnp.bfloat16)
    # --- QKV projections (bf16 MXU operands, f32 accumulate) ---
    q = jnp.dot(hb, wq_ref[...], preferred_element_type=jnp.float32)   # (S, D)
    k = jnp.dot(hb, wk_ref[...], preferred_element_type=jnp.float32)
    v = jnp.dot(hb, wv_ref[...], preferred_element_type=jnp.float32)
    # --- RoPE: interleaved pair rotation as a signed-permutation matmul (f32) ---
    cosf = cos_ref[...]
    sinf = sin_ref[...]
    q = q * cosf + jnp.dot(q, rot_ref[...], preferred_element_type=jnp.float32) * sinf
    k = k * cosf + jnp.dot(k, rot_ref[...], preferred_element_type=jnp.float32) * sinf
    # --- multi-head causal attention; heads stay packed along lanes ---
    # Expand queries to (H*S, D): row h*S+i is q[i] masked to head h's columns.
    q_exp = jnp.dot(emat_ref[...], q, preferred_element_type=jnp.float32) * hmask_ref[...]
    scores = jax.lax.dot_general(
        q_exp.astype(jnp.bfloat16), k.astype(jnp.bfloat16),
        (((1,), (1,)), ((), ())), preferred_element_type=jnp.float32)   # (H*S, S)
    scores = scores * (1.0 / math.sqrt(head_dim)) + cmask_ref[...]      # causal mask
    m = jnp.max(scores, axis=-1, keepdims=True)
    p = jnp.exp(scores - m)                                             # f32 softmax
    denom = jnp.sum(p, axis=-1, keepdims=True)
    pv = jnp.dot(p.astype(jnp.bfloat16), v.astype(jnp.bfloat16),
                 preferred_element_type=jnp.float32)                    # (H*S, D)
    pv = pv * pl.reciprocal(denom, approx=True)        # normalize after PV (EUP slot)
    attn = jnp.dot(gmat_ref[...], pv * hmask_ref[...],
                   preferred_element_type=jnp.float32)                  # (S, D)
    # --- output projection + fused residual add ---
    o_ref[0] = x + jnp.dot(attn.astype(jnp.bfloat16), wp_ref[...],
                           preferred_element_type=jnp.float32)


def _ffn_block_kernel(x_ref, nw_ref, w13_ref, w2z_ref, o_ref, *, hidden_dim):
    """Fused SwiGLU block: x + W2( silu(W1 h) * (W3 h) ), h = RMSNorm(x)."""
    x = x_ref[...]                                             # (TM, D) f32
    inv = jax.lax.rsqrt(jnp.mean(x * x, axis=-1, keepdims=True) + 1e-6)
    h = (x * inv) * nw_ref[...]
    # single lane-dense MXU pass: [h1 | h3] = h @ [w1 | w3]   -> (TM, 2H)
    h13 = jnp.dot(h.astype(jnp.bfloat16), w13_ref[...],
                  preferred_element_type=jnp.float32)
    # swap halves along lanes so each column of h1 lines up with its h3 partner;
    # the second (garbage) half of the gated product is killed by w2z's zero rows.
    swapped = pltpu.roll(h13, shift=hidden_dim, axis=1)
    g = jax.nn.silu(h13) * swapped                             # cols [:H] = silu(h1)*h3
    o_ref[...] = x + jnp.dot(g.astype(jnp.bfloat16), w2z_ref[...],
                             preferred_element_type=jnp.float32)


def _lm_head_kernel(x_ref, nw_ref, wv_ref, o_ref):
    """Fused final RMSNorm + vocab projection."""
    x = x_ref[...]
    inv = jax.lax.rsqrt(jnp.mean(x * x, axis=-1, keepdims=True) + 1e-6)
    h = (x * inv) * nw_ref[...]
    o_ref[...] = jnp.dot(h.astype(jnp.bfloat16), wv_ref[...],
                         preferred_element_type=jnp.float32)


# ------------------------------ helpers / wrappers --------------------------- #

def _row_tile(m, target=512):
    """Largest multiple-of-8 row tile dividing m, capped at `target`."""
    if m % 8 != 0:
        return m                      # full-extent fallback (block == array dim)
    tm = min(m, target)
    tm -= tm % 8
    while m % tm != 0:
        tm -= 8
    return tm


def _bytes(*arrays):
    return int(sum(a.size * a.dtype.itemsize for a in arrays))


def pallas_attention_block(x, norm_w, wq, wk, wv, wproj, consts, head_dim):
    B, S, D = x.shape
    HS = consts["emat"].shape[0]

    def full2d(shape):
        return pl.BlockSpec(shape, lambda b: (0, 0))

    cost = pl.CostEstimate(
        flops=int(2 * B * (S * D * D * 6 + 4 * HS * S * D)),
        transcendentals=int(B * HS * S),
        bytes_accessed=_bytes(x, x, wq, wk, wv, wproj,
                              consts["cos2"], consts["sin2"], consts["hmask"]),
    )
    return pl.pallas_call(
        partial(_attn_block_kernel, head_dim=head_dim),
        out_shape=jax.ShapeDtypeStruct((B, S, D), jnp.float32),
        grid=(B,),
        in_specs=[
            pl.BlockSpec((1, S, D), lambda b: (b, 0, 0)),      # x
            full2d((1, D)),                                    # rmsnorm weight
            full2d((D, D)), full2d((D, D)), full2d((D, D)),    # wq, wk, wv (bf16)
            full2d((D, D)),                                    # wproj (bf16)
            full2d((D, D)),                                    # RoPE rotation matrix
            full2d((S, D)), full2d((S, D)),                    # cos, sin (expanded)
            full2d((HS, S)), full2d((S, HS)),                  # expand / gather mats
            full2d((HS, D)), full2d((HS, S)),                  # head mask / causal mask
        ],
        out_specs=pl.BlockSpec((1, S, D), lambda b: (b, 0, 0)),
        compiler_params=pltpu.CompilerParams(dimension_semantics=("parallel",)),
        cost_estimate=cost,
    )(x, norm_w.reshape(1, D), wq, wk, wv, wproj,
      consts["rot"], consts["cos2"], consts["sin2"],
      consts["emat"], consts["gmat"], consts["hmask"], consts["cmask"])


def pallas_ffn_block(x, norm_w, w13, w2z, hidden_dim):
    B, S, D = x.shape
    M = B * S
    H2 = w13.shape[1]
    tm = _row_tile(M)
    cost = pl.CostEstimate(
        flops=int(4 * M * D * H2),
        transcendentals=int(M * H2),
        bytes_accessed=_bytes(x, x, w13, w2z),
    )
    out = pl.pallas_call(
        partial(_ffn_block_kernel, hidden_dim=hidden_dim),
        out_shape=jax.ShapeDtypeStruct((M, D), jnp.float32),
        grid=(M // tm,),
        in_specs=[pl.BlockSpec((tm, D), lambda i: (i, 0)),
                  pl.BlockSpec((1, D), lambda i: (0, 0)),
                  pl.BlockSpec((D, H2), lambda i: (0, 0)),
                  pl.BlockSpec((H2, D), lambda i: (0, 0))],
        out_specs=pl.BlockSpec((tm, D), lambda i: (i, 0)),
        compiler_params=pltpu.CompilerParams(dimension_semantics=("parallel",)),
        cost_estimate=cost,
    )(x.reshape(M, D), norm_w.reshape(1, D), w13, w2z)
    return out.reshape(B, S, D)


def pallas_lm_head(x, norm_w, wvocab):
    B, S, D = x.shape
    V = wvocab.shape[1]
    M = B * S
    tm = _row_tile(M)
    cost = pl.CostEstimate(
        flops=int(2 * M * D * V), transcendentals=0,
        bytes_accessed=_bytes(x, wvocab) + 4 * M * V,
    )
    out = pl.pallas_call(
        _lm_head_kernel,
        out_shape=jax.ShapeDtypeStruct((M, V), jnp.float32),
        grid=(M // tm,),
        in_specs=[pl.BlockSpec((tm, D), lambda i: (i, 0)),
                  pl.BlockSpec((1, D), lambda i: (0, 0)),
                  pl.BlockSpec((D, V), lambda i: (0, 0))],
        out_specs=pl.BlockSpec((tm, V), lambda i: (i, 0)),
        compiler_params=pltpu.CompilerParams(dimension_semantics=("parallel",)),
        cost_estimate=cost,
    )(x.reshape(M, D), norm_w.reshape(1, D), wvocab)
    return out.reshape(B, S, V)


# ------------------------- constant precomputation (host JAX) ----------------- #

def precompute_rope(head_dim, seq_len, num_heads, d_model, theta=10000.0):
    """cos/sin expanded to (S, D) interleaved-per-pair, tiled per head, plus the
    signed-permutation matrix R with (x @ R)[2i] = -x[2i+1], (x @ R)[2i+1] = x[2i]."""
    freqs = 1.0 / (theta ** (jnp.arange(0, head_dim, 2)[: head_dim // 2]
                             .astype(jnp.float32) / head_dim))
    t = jnp.arange(seq_len, dtype=jnp.float32)
    freqs = jnp.outer(t, freqs)                                 # (S, Dh//2)
    cos2 = jnp.tile(jnp.repeat(jnp.cos(freqs), 2, axis=1), (1, num_heads))  # (S, D)
    sin2 = jnp.tile(jnp.repeat(jnp.sin(freqs), 2, axis=1), (1, num_heads))  # (S, D)
    idx = jnp.arange(0, d_model, 2)
    rot = jnp.zeros((d_model, d_model), jnp.float32)
    rot = rot.at[idx + 1, idx].set(-1.0)
    rot = rot.at[idx, idx + 1].set(1.0)
    return cos2, sin2, rot


def attn_constants(seq_len, num_heads, head_dim, d_model):
    """Constant matrices for reshape-free multi-head attention inside the kernel."""
    S, Hn, Dh, D = seq_len, num_heads, head_dim, d_model
    HS = Hn * S
    r = jnp.arange(HS)
    emat = (r[:, None] % S == jnp.arange(S)[None, :]).astype(jnp.float32)        # (HS, S)
    gmat = emat.T                                                                # (S, HS)
    hmask = (r[:, None] // S == jnp.arange(D)[None, :] // Dh).astype(jnp.float32)  # (HS, D)
    cmask = jnp.where(jnp.arange(S)[None, :] <= (r[:, None] % S),
                      0.0, -1e30).astype(jnp.float32)                            # (HS, S)
    return emat, gmat, hmask, cmask


# ------------------------------ model definition ----------------------------- #

CFG = dict(vocab_size=64, seq_len=8, d_model=32, hidden_dim=64,
           num_heads=4, num_layers=2)


def init_params(key, cfg):
    D, H, V = cfg["d_model"], cfg["hidden_dim"], cfg["vocab_size"]

    def lin(k, fan_in, fan_out):
        # nn.Linear / nn.Embedding init: normal(mean=0, std=0.02), no bias
        return 0.02 * jax.random.normal(k, (fan_in, fan_out), jnp.float32)

    keys = jax.random.split(key, 2 + cfg["num_layers"])
    params = {
        "token_emb": 0.02 * jax.random.normal(keys[0], (V, D), jnp.float32),
        "vocab_proj": lin(keys[1], D, V),
        "final_norm": jnp.ones((D,), jnp.float32),
        "layers": [],
    }
    for li in range(cfg["num_layers"]):
        lk = jax.random.split(keys[2 + li], 7)
        params["layers"].append({
            "wk": lin(lk[0], D, D),
            "wq": lin(lk[1], D, D),
            "wv": lin(lk[2], D, D),
            "wproj": lin(lk[3], D, D),
            "norm1": jnp.ones((D,), jnp.float32),
            "norm2": jnp.ones((D,), jnp.float32),
            "w1": lin(lk[4], D, H),
            "w2": lin(lk[5], H, D),
            "w3": lin(lk[6], D, H),
        })
    return params


def forward(params, tokens, cfg):
    B, S = tokens.shape
    D = cfg["d_model"]
    Hn = cfg["num_heads"]
    Dh = D // Hn
    Hd = cfg["hidden_dim"]
    bf16 = jnp.bfloat16

    x = jnp.take(params["token_emb"], tokens, axis=0)     # (B,S,D) embedding gather (glue)

    cos2, sin2, rot = precompute_rope(Dh, S, Hn, D)
    emat, gmat, hmask, cmask = attn_constants(S, Hn, Dh, D)
    consts = dict(rot=rot, cos2=cos2, sin2=sin2,
                  emat=emat, gmat=gmat, hmask=hmask, cmask=cmask)

    for layer in params["layers"]:
        # --- fused attention sub-block (RMSNorm + QKV + RoPE + SDPA + proj + residual) ---
        x = pallas_attention_block(
            x, layer["norm1"],
            layer["wq"].astype(bf16), layer["wk"].astype(bf16),
            layer["wv"].astype(bf16), layer["wproj"].astype(bf16),
            consts, Dh)
        # --- fused feed-forward sub-block (RMSNorm + SwiGLU + residual) ---
        w13 = jnp.concatenate([layer["w1"], layer["w3"]], axis=1).astype(bf16)   # (D, 2H)
        w2z = jnp.concatenate([layer["w2"], jnp.zeros_like(layer["w2"])],
                              axis=0).astype(bf16)                               # (2H, D)
        x = pallas_ffn_block(x, layer["norm2"], w13, w2z, Hd)

    # --- fused final norm + vocab projection ---
    logits = pallas_lm_head(x, params["final_norm"], params["vocab_proj"].astype(bf16))
    return logits


if __name__ == "__main__":
    key = jax.random.PRNGKey(0)
    pkey, tkey = jax.random.split(key)
    params = init_params(pkey, CFG)
    tokens = jax.random.randint(tkey, (2, CFG["seq_len"]), 0, CFG["vocab_size"],
                                dtype=jnp.int32)

    fwd = jax.jit(partial(forward, cfg=CFG))
    logits = fwd(params, tokens)
    jax.block_until_ready(logits)

    assert logits.shape == (2, CFG["seq_len"], CFG["vocab_size"])
    assert logits.dtype == jnp.float32
    print("KERNEL_OK")
</pallas_src>

<mosaic_0001>
module attributes {stable_mosaic.version = 11 : i64} {
  func.func @_attn_block_kernel(%arg0: i32, %arg1: memref<1x8x32xf32, #tpu.memory_space<vmem>>, %arg2: memref<1x32xf32, #tpu.memory_space<vmem>>, %arg3: memref<32x32xbf16, #tpu.memory_space<vmem>>, %arg4: memref<32x32xbf16, #tpu.memory_space<vmem>>, %arg5: memref<32x32xbf16, #tpu.memory_space<vmem>>, %arg6: memref<32x32xbf16, #tpu.memory_space<vmem>>, %arg7: memref<32x32xf32, #tpu.memory_space<vmem>>, %arg8: memref<8x32xf32, #tpu.memory_space<vmem>>, %arg9: memref<8x32xf32, #tpu.memory_space<vmem>>, %arg10: memref<32x8xf32, #tpu.memory_space<vmem>>, %arg11: memref<8x32xf32, #tpu.memory_space<vmem>>, %arg12: memref<32x32xf32, #tpu.memory_space<vmem>>, %arg13: memref<32x8xf32, #tpu.memory_space<vmem>>, %arg14: memref<1x8x32xf32, #tpu.memory_space<vmem>>) attributes {dimension_semantics = [#tpu.dimension_semantics<parallel>], iteration_bounds = array<i64: 2>, scalar_prefetch = 0 : i64, scratch_operands = 0 : i64, tpu.core_type = #tpu.core_type<tc>, window_params = [{transform_indices = @transform_0, window_bounds = array<i64: 1, 8, 32>}, {pipeline_mode = #tpu.pipeline_mode<synchronous>, transform_indices = @transform_1, window_bounds = array<i64: 1, 32>}, {pipeline_mode = #tpu.pipeline_mode<synchronous>, transform_indices = @transform_2, window_bounds = array<i64: 32, 32>}, {pipeline_mode = #tpu.pipeline_mode<synchronous>, transform_indices = @transform_3, window_bounds = array<i64: 32, 32>}, {pipeline_mode = #tpu.pipeline_mode<synchronous>, transform_indices = @transform_4, window_bounds = array<i64: 32, 32>}, {pipeline_mode = #tpu.pipeline_mode<synchronous>, transform_indices = @transform_5, window_bounds = array<i64: 32, 32>}, {pipeline_mode = #tpu.pipeline_mode<synchronous>, transform_indices = @transform_6, window_bounds = array<i64: 32, 32>}, {pipeline_mode = #tpu.pipeline_mode<synchronous>, transform_indices = @transform_7, window_bounds = array<i64: 8, 32>}, {pipeline_mode = #tpu.pipeline_mode<synchronous>, transform_indices = @transform_8, window_bounds = array<i64: 8, 32>}, {pipeline_mode = #tpu.pipeline_mode<synchronous>, transform_indices = @transform_9, window_bounds = array<i64: 32, 8>}, {pipeline_mode = #tpu.pipeline_mode<synchronous>, transform_indices = @transform_10, window_bounds = array<i64: 8, 32>}, {pipeline_mode = #tpu.pipeline_mode<synchronous>, transform_indices = @transform_11, window_bounds = array<i64: 32, 32>}, {pipeline_mode = #tpu.pipeline_mode<synchronous>, transform_indices = @transform_12, window_bounds = array<i64: 32, 8>}, {transform_indices = @transform_13, window_bounds = array<i64: 1, 8, 32>}]} {
    %c0 = arith.constant 0 : index
    %c0_0 = arith.constant 0 : index
    %c0_1 = arith.constant 0 : index
    %0 = vector.load %arg1[%c0, %c0_0, %c0_1] : memref<1x8x32xf32, #tpu.memory_space<vmem>>, vector<1x8x32xf32>
    %1 = vector.shape_cast %0 : vector<1x8x32xf32> to vector<8x32xf32>
    %2 = arith.mulf %1, %1 : vector<8x32xf32>
    %cst = arith.constant dense<0.000000e+00> : vector<8xf32>
    %3 = vector.multi_reduction <add>, %2, %cst [1] : vector<8x32xf32> to vector<8xf32>
    %4 = vector.shape_cast %3 : vector<8xf32> to vector<8x1xf32>
    %cst_2 = arith.constant 3.200000e+01 : f32
    %5 = vector.broadcast %cst_2 : f32 to vector<8x1xf32>
    %6 = arith.divf %4, %5 : vector<8x1xf32>
    %cst_3 = arith.constant 9.99999997E-7 : f32
    %7 = vector.broadcast %cst_3 : f32 to vector<8x1xf32>
    %8 = arith.addf %6, %7 : vector<8x1xf32>
    %9 = math.rsqrt %8 : vector<8x1xf32>
    %10 = vector.broadcast %9 : vector<8x1xf32> to vector<8x32xf32>
    %11 = arith.mulf %1, %10 : vector<8x32xf32>
    %c0_4 = arith.constant 0 : index
    %c0_5 = arith.constant 0 : index
    %12 = vector.load %arg2[%c0_4, %c0_5] : memref<1x32xf32, #tpu.memory_space<vmem>>, vector<1x32xf32>
    %13 = vector.broadcast %12 : vector<1x32xf32> to vector<8x32xf32>
    %14 = arith.mulf %11, %13 : vector<8x32xf32>
    %15 = arith.truncf %14 : vector<8x32xf32> to vector<8x32xbf16>
    %c0_6 = arith.constant 0 : index
    %c0_7 = arith.constant 0 : index
    %16 = vector.load %arg3[%c0_6, %c0_7] : memref<32x32xbf16, #tpu.memory_space<vmem>>, vector<32x32xbf16>
    %cst_8 = arith.constant dense<0.000000e+00> : vector<8x32xf32>
    %17 = tpu.matmul %15, %16, %cst_8 {dimension_numbers = #tpu.dot_dimension_numbers<[1], [0], [0], [1], [0, 0, 1, 1], [], []>} : vector<8x32xbf16>, vector<32x32xbf16>, vector<8x32xf32> -> vector<8x32xf32>
    %c0_9 = arith.constant 0 : index
    %c0_10 = arith.constant 0 : index
    %18 = vector.load %arg4[%c0_9, %c0_10] : memref<32x32xbf16, #tpu.memory_space<vmem>>, vector<32x32xbf16>
    %cst_11 = arith.constant dense<0.000000e+00> : vector<8x32xf32>
    %19 = tpu.matmul %15, %18, %cst_11 {dimension_numbers = #tpu.dot_dimension_numbers<[1], [0], [0], [1], [0, 0, 1, 1], [], []>} : vector<8x32xbf16>, vector<32x32xbf16>, vector<8x32xf32> -> vector<8x32xf32>
    %c0_12 = arith.constant 0 : index
    %c0_13 = arith.constant 0 : index
    %20 = vector.load %arg5[%c0_12, %c0_13] : memref<32x32xbf16, #tpu.memory_space<vmem>>, vector<32x32xbf16>
    %cst_14 = arith.constant dense<0.000000e+00> : vector<8x32xf32>
    %21 = tpu.matmul %15, %20, %cst_14 {dimension_numbers = #tpu.dot_dimension_numbers<[1], [0], [0], [1], [0, 0, 1, 1], [], []>} : vector<8x32xbf16>, vector<32x32xbf16>, vector<8x32xf32> -> vector<8x32xf32>
    %c0_15 = arith.constant 0 : index
    %c0_16 = arith.constant 0 : index
    %22 = vector.load %arg8[%c0_15, %c0_16] : memref<8x32xf32, #tpu.memory_space<vmem>>, vector<8x32xf32>
    %c0_17 = arith.constant 0 : index
    %c0_18 = arith.constant 0 : index
    %23 = vector.load %arg9[%c0_17, %c0_18] : memref<8x32xf32, #tpu.memory_space<vmem>>, vector<8x32xf32>
    %24 = arith.mulf %17, %22 : vector<8x32xf32>
    %c0_19 = arith.constant 0 : index
    %c0_20 = arith.constant 0 : index
    %25 = vector.load %arg7[%c0_19, %c0_20] : memref<32x32xf32, #tpu.memory_space<vmem>>, vector<32x32xf32>
    %cst_21 = arith.constant dense<0.000000e+00> : vector<8x32xf32>
    %26 = tpu.matmul %17, %25, %cst_21 {dimension_numbers = #tpu.dot_dimension_numbers<[1], [0], [0], [1], [0, 0, 1, 1], [], []>} : vector<8x32xf32>, vector<32x32xf32>, vector<8x32xf32> -> vector<8x32xf32>
    %27 = arith.mulf %26, %23 : vector<8x32xf32>
    %28 = arith.addf %24, %27 : vector<8x32xf32>
    %29 = arith.mulf %19, %22 : vector<8x32xf32>
    %c0_22 = arith.constant 0 : index
    %c0_23 = arith.constant 0 : index
    %30 = vector.load %arg7[%c0_22, %c0_23] : memref<32x32xf32, #tpu.memory_space<vmem>>, vector<32x32xf32>
    %cst_24 = arith.constant dense<0.000000e+00> : vector<8x32xf32>
    %31 = tpu.matmul %19, %30, %cst_24 {dimension_numbers = #tpu.dot_dimension_numbers<[1], [0], [0], [1], [0, 0, 1, 1], [], []>} : vector<8x32xf32>, vector<32x32xf32>, vector<8x32xf32> -> vector<8x32xf32>
    %32 = arith.mulf %31, %23 : vector<8x32xf32>
    %33 = arith.addf %29, %32 : vector<8x32xf32>
    %c0_25 = arith.constant 0 : index
    %c0_26 = arith.constant 0 : index
    %34 = vector.load %arg10[%c0_25, %c0_26] : memref<32x8xf32, #tpu.memory_space<vmem>>, vector<32x8xf32>
    %cst_27 = arith.constant dense<0.000000e+00> : vector<32x32xf32>
    %35 = tpu.matmul %34, %28, %cst_27 {dimension_numbers = #tpu.dot_dimension_numbers<[1], [0], [0], [1], [0, 0, 1, 1], [], []>} : vector<32x8xf32>, vector<8x32xf32>, vector<32x32xf32> -> vector<32x32xf32>
    %c0_28 = arith.constant 0 : index
    %c0_29 = arith.constant 0 : index
    %36 = vector.load %arg12[%c0_28, %c0_29] : memref<32x32xf32, #tpu.memory_space<vmem>>, vector<32x32xf32>
    %37 = arith.mulf %35, %36 : vector<32x32xf32>
    %38 = arith.truncf %37 : vector<32x32xf32> to vector<32x32xbf16>
    %39 = arith.truncf %33 : vector<8x32xf32> to vector<8x32xbf16>
    %cst_30 = arith.constant dense<0.000000e+00> : vector<32x8xf32>
    %40 = tpu.matmul %38, %39, %cst_30 {dimension_numbers = #tpu.dot_dimension_numbers<[1], [1], [0], [0], [0, 0, 1, 0], [], []>} : vector<32x32xbf16>, vector<8x32xbf16>, vector<32x8xf32> -> vector<32x8xf32>
    %cst_31 = arith.constant 0.353553385 : f32
    %41 = vector.broadcast %cst_31 : f32 to vector<32x8xf32>
    %42 = arith.mulf %40, %41 : vector<32x8xf32>
    %c0_32 = arith.constant 0 : index
    %c0_33 = arith.constant 0 : index
    %43 = vector.load %arg13[%c0_32, %c0_33] : memref<32x8xf32, #tpu.memory_space<vmem>>, vector<32x8xf32>
    %44 = arith.addf %42, %43 : vector<32x8xf32>
    %cst_34 = arith.constant dense<0xFF800000> : vector<32xf32>
    %45 = vector.multi_reduction <maximumf>, %44, %cst_34 [1] : vector<32x8xf32> to vector<32xf32>
    %46 = vector.shape_cast %45 : vector<32xf32> to vector<32x1xf32>
    %47 = vector.broadcast %46 : vector<32x1xf32> to vector<32x8xf32>
    %48 = arith.subf %44, %47 : vector<32x8xf32>
    %49 = math.exp %48 : vector<32x8xf32>
    %cst_35 = arith.constant dense<0.000000e+00> : vector<32xf32>
    %50 = vector.multi_reduction <add>, %49, %cst_35 [1] : vector<32x8xf32> to vector<32xf32>
    %51 = vector.shape_cast %50 : vector<32xf32> to vector<32x1xf32>
    %52 = arith.truncf %49 : vector<32x8xf32> to vector<32x8xbf16>
    %53 = arith.truncf %21 : vector<8x32xf32> to vector<8x32xbf16>
    %cst_36 = arith.constant dense<0.000000e+00> : vector<32x32xf32>
    %54 = tpu.matmul %52, %53, %cst_36 {dimension_numbers = #tpu.dot_dimension_numbers<[1], [0], [0], [1], [0, 0, 1, 1], [], []>} : vector<32x8xbf16>, vector<8x32xbf16>, vector<32x32xf32> -> vector<32x32xf32>
    %55 = tpu.reciprocal %51 {approx = true} : vector<32x1xf32> -> vector<32x1xf32>
    %56 = vector.broadcast %55 : vector<32x1xf32> to vector<32x32xf32>
    %57 = arith.mulf %54, %56 : vector<32x32xf32>
    %c0_37 = arith.constant 0 : index
    %c0_38 = arith.constant 0 : index
    %58 = vector.load %arg11[%c0_37, %c0_38] : memref<8x32xf32, #tpu.memory_space<vmem>>, vector<8x32xf32>
    %c0_39 = arith.constant 0 : index
    %c0_40 = arith.constant 0 : index
    %59 = vector.load %arg12[%c0_39, %c0_40] : memref<32x32xf32, #tpu.memory_space<vmem>>, vector<32x32xf32>
    %60 = arith.mulf %57, %59 : vector<32x32xf32>
    %cst_41 = arith.constant dense<0.000000e+00> : vector<8x32xf32>
    %61 = tpu.matmul %58, %60, %cst_41 {dimension_numbers = #tpu.dot_dimension_numbers<[1], [0], [0], [1], [0, 0, 1, 1], [], []>} : vector<8x32xf32>, vector<32x32xf32>, vector<8x32xf32> -> vector<8x32xf32>
    %62 = arith.truncf %61 : vector<8x32xf32> to vector<8x32xbf16>
    %c0_42 = arith.constant 0 : index
    %c0_43 = arith.constant 0 : index
    %63 = vector.load %arg6[%c0_42, %c0_43] : memref<32x32xbf16, #tpu.memory_space<vmem>>, vector<32x32xbf16>
    %cst_44 = arith.constant dense<0.000000e+00> : vector<8x32xf32>
    %64 = tpu.matmul %62, %63, %cst_44 {dimension_numbers = #tpu.dot_dimension_numbers<[1], [0], [0], [1], [0, 0, 1, 1], [], []>} : vector<8x32xbf16>, vector<32x32xbf16>, vector<8x32xf32> -> vector<8x32xf32>
    %65 = arith.addf %1, %64 : vector<8x32xf32>
    %c0_45 = arith.constant 0 : index
    %c0_46 = arith.constant 0 : index
    %c0_47 = arith.constant 0 : index
    %66 = vector.load %arg14[%c0_45, %c0_46, %c0_47] : memref<1x8x32xf32, #tpu.memory_space<vmem>>, vector<1x8x32xf32>
    %67 = vector.shape_cast %66 : vector<1x8x32xf32> to vector<8x32xf32>
    %68 = vector.shape_cast %65 : vector<8x32xf32> to vector<1x8x32xf32>
    tpu.vector_store %arg14[%c0_45, %c0_46, %c0_47], %68 {strides = array<i32>} : memref<1x8x32xf32, #tpu.memory_space<vmem>>, vector<1x8x32xf32>,
    return
  }
  func.func @transform_0(%arg0: i32) -> (i32, i32, i32) {
    %c0_i32 = arith.constant 0 : i32
    %c0_i32_0 = arith.constant 0 : i32
    %c0_i32_1 = arith.constant 0 : i32
    return %arg0, %c0_i32, %c0_i32_0 : i32, i32, i32
  }
  func.func @transform_1(%arg0: i32) -> (i32, i32) {
    %c0_i32 = arith.constant 0 : i32
    %c0_i32_0 = arith.constant 0 : i32
    %c0_i32_1 = arith.constant 0 : i32
    return %c0_i32, %c0_i32_0 : i32, i32
  }
  func.func @transform_2(%arg0: i32) -> (i32, i32) {
    %c0_i32 = arith.constant 0 : i32
    %c0_i32_0 = arith.constant 0 : i32
    %c0_i32_1 = arith.constant 0 : i32
    return %c0_i32, %c0_i32_0 : i32, i32
  }
  func.func @transform_3(%arg0: i32) -> (i32, i32) {
    %c0_i32 = arith.constant 0 : i32
    %c0_i32_0 = arith.constant 0 : i32
    %c0_i32_1 = arith.constant 0 : i32
    return %c0_i32, %c0_i32_0 : i32, i32
  }
  func.func @transform_4(%arg0: i32) -> (i32, i32) {
    %c0_i32 = arith.constant 0 : i32
    %c0_i32_0 = arith.constant 0 : i32
    %c0_i32_1 = arith.constant 0 : i32
    return %c0_i32, %c0_i32_0 : i32, i32
  }
  func.func @transform_5(%arg0: i32) -> (i32, i32) {
    %c0_i32 = arith.constant 0 : i32
    %c0_i32_0 = arith.constant 0 : i32
    %c0_i32_1 = arith.constant 0 : i32
    return %c0_i32, %c0_i32_0 : i32, i32
  }
  func.func @transform_6(%arg0: i32) -> (i32, i32) {
    %c0_i32 = arith.constant 0 : i32
    %c0_i32_0 = arith.constant 0 : i32
    %c0_i32_1 = arith.constant 0 : i32
    return %c0_i32, %c0_i32_0 : i32, i32
  }
  func.func @transform_7(%arg0: i32) -> (i32, i32) {
    %c0_i32 = arith.constant 0 : i32
    %c0_i32_0 = arith.constant 0 : i32
    %c0_i32_1 = arith.constant 0 : i32
    return %c0_i32, %c0_i32_0 : i32, i32
  }
  func.func @transform_8(%arg0: i32) -> (i32, i32) {
    %c0_i32 = arith.constant 0 : i32
    %c0_i32_0 = arith.constant 0 : i32
    %c0_i32_1 = arith.constant 0 : i32
    return %c0_i32, %c0_i32_0 : i32, i32
  }
  func.func @transform_9(%arg0: i32) -> (i32, i32) {
    %c0_i32 = arith.constant 0 : i32
    %c0_i32_0 = arith.constant 0 : i32
    %c0_i32_1 = arith.constant 0 : i32
    return %c0_i32, %c0_i32_0 : i32, i32
  }
  func.func @transform_10(%arg0: i32) -> (i32, i32) {
    %c0_i32 = arith.constant 0 : i32
    %c0_i32_0 = arith.constant 0 : i32
    %c0_i32_1 = arith.constant 0 : i32
    return %c0_i32, %c0_i32_0 : i32, i32
  }
  func.func @transform_11(%arg0: i32) -> (i32, i32) {
    %c0_i32 = arith.constant 0 : i32
    %c0_i32_0 = arith.constant 0 : i32
    %c0_i32_1 = arith.constant 0 : i32
    return %c0_i32, %c0_i32_0 : i32, i32
  }
  func.func @transform_12(%arg0: i32) -> (i32, i32) {
    %c0_i32 = arith.constant 0 : i32
    %c0_i32_0 = arith.constant 0 : i32
    %c0_i32_1 = arith.constant 0 : i32
    return %c0_i32, %c0_i32_0 : i32, i32
  }
  func.func @transform_13(%arg0: i32) -> (i32, i32, i32) {
    %c0_i32 = arith.constant 0 : i32
    %c0_i32_0 = arith.constant 0 : i32
    %c0_i32_1 = arith.constant 0 : i32
    return %arg0, %c0_i32, %c0_i32_0 : i32, i32, i32
  }
}

module attributes {stable_mosaic.version = 11 : i64} {
  func.func @_ffn_block_kernel(%arg0: i32, %arg1: memref<16x32xf32, #tpu.memory_space<vmem>>, %arg2: memref<1x32xf32, #tpu.memory_space<vmem>>, %arg3: memref<32x128xbf16, #tpu.memory_space<vmem>>, %arg4: memref<128x32xbf16, #tpu.memory_space<vmem>>, %arg5: memref<16x32xf32, #tpu.memory_space<vmem>>) attributes {dimension_semantics = [#tpu.dimension_semantics<parallel>], iteration_bounds = array<i64: 1>, scalar_prefetch = 0 : i64, scratch_operands = 0 : i64, tpu.core_type = #tpu.core_type<tc>, window_params = [{transform_indices = @transform_0, window_bounds = array<i64: 16, 32>}, {pipeline_mode = #tpu.pipeline_mode<synchronous>, transform_indices = @transform_1, window_bounds = array<i64: 1, 32>}, {pipeline_mode = #tpu.pipeline_mode<synchronous>, transform_indices = @transform_2, window_bounds = array<i64: 32, 128>}, {pipeline_mode = #tpu.pipeline_mode<synchronous>, transform_indices = @transform_3, window_bounds = array<i64: 128, 32>}, {transform_indices = @transform_4, window_bounds = array<i64: 16, 32>}]} {
    %c0 = arith.constant 0 : index
    %c0_0 = arith.constant 0 : index
    %0 = vector.load %arg1[%c0, %c0_0] : memref<16x32xf32, #tpu.memory_space<vmem>>, vector<16x32xf32>
    %1 = arith.mulf %0, %0 : vector<16x32xf32>
    %cst = arith.constant dense<0.000000e+00> : vector<16xf32>
    %2 = vector.multi_reduction <add>, %1, %cst [1] : vector<16x32xf32> to vector<16xf32>
    %3 = vector.shape_cast %2 : vector<16xf32> to vector<16x1xf32>
    %cst_1 = arith.constant 3.200000e+01 : f32
    %4 = vector.broadcast %cst_1 : f32 to vector<16x1xf32>
    %5 = arith.divf %3, %4 : vector<16x1xf32>
    %cst_2 = arith.constant 9.99999997E-7 : f32
    %6 = vector.broadcast %cst_2 : f32 to vector<16x1xf32>
    %7 = arith.addf %5, %6 : vector<16x1xf32>
    %8 = math.rsqrt %7 : vector<16x1xf32>
    %9 = vector.broadcast %8 : vector<16x1xf32> to vector<16x32xf32>
    %10 = arith.mulf %0, %9 : vector<16x32xf32>
    %c0_3 = arith.constant 0 : index
    %c0_4 = arith.constant 0 : index
    %11 = vector.load %arg2[%c0_3, %c0_4] : memref<1x32xf32, #tpu.memory_space<vmem>>, vector<1x32xf32>
    %12 = vector.broadcast %11 : vector<1x32xf32> to vector<16x32xf32>
    %13 = arith.mulf %10, %12 : vector<16x32xf32>
    %14 = arith.truncf %13 : vector<16x32xf32> to vector<16x32xbf16>
    %c0_5 = arith.constant 0 : index
    %c0_6 = arith.constant 0 : index
    %15 = vector.load %arg3[%c0_5, %c0_6] : memref<32x128xbf16, #tpu.memory_space<vmem>>, vector<32x128xbf16>
    %cst_7 = arith.constant dense<0.000000e+00> : vector<16x128xf32>
    %16 = tpu.matmul %14, %15, %cst_7 {dimension_numbers = #tpu.dot_dimension_numbers<[1], [0], [0], [1], [0, 0, 1, 1], [], []>} : vector<16x32xbf16>, vector<32x128xbf16>, vector<16x128xf32> -> vector<16x128xf32>
    %c64_i32 = arith.constant 64 : i32
    %17 = tpu.dynamic_rotate %16 by %c64_i32 dim 1 : vector<16x128xf32>, i32 -> vector<16x128xf32>
    %18 = arith.negf %16 : vector<16x128xf32>
    %19 = math.exp %18 : vector<16x128xf32>
    %cst_8 = arith.constant 1.000000e+00 : f32
    %20 = vector.broadcast %cst_8 : f32 to vector<16x128xf32>
    %21 = arith.addf %20, %19 : vector<16x128xf32>
    %22 = arith.divf %20, %21 : vector<16x128xf32>
    %23 = arith.mulf %16, %22 : vector<16x128xf32>
    %24 = arith.mulf %23, %17 : vector<16x128xf32>
    %25 = arith.truncf %24 : vector<16x128xf32> to vector<16x128xbf16>
    %c0_9 = arith.constant 0 : index
    %c0_10 = arith.constant 0 : index
    %26 = vector.load %arg4[%c0_9, %c0_10] : memref<128x32xbf16, #tpu.memory_space<vmem>>, vector<128x32xbf16>
    %cst_11 = arith.constant dense<0.000000e+00> : vector<16x32xf32>
    %27 = tpu.matmul %25, %26, %cst_11 {dimension_numbers = #tpu.dot_dimension_numbers<[1], [0], [0], [1], [0, 0, 1, 1], [], []>} : vector<16x128xbf16>, vector<128x32xbf16>, vector<16x32xf32> -> vector<16x32xf32>
    %28 = arith.addf %0, %27 : vector<16x32xf32>
    %c0_12 = arith.constant 0 : index
    %c0_13 = arith.constant 0 : index
    %29 = vector.load %arg5[%c0_12, %c0_13] : memref<16x32xf32, #tpu.memory_space<vmem>>, vector<16x32xf32>
    tpu.vector_store %arg5[%c0_12, %c0_13], %28 {strides = array<i32>} : memref<16x32xf32, #tpu.memory_space<vmem>>, vector<16x32xf32>,
    return
  }
  func.func @transform_0(%arg0: i32) -> (i32, i32) {
    %c0_i32 = arith.constant 0 : i32
    %c0_i32_0 = arith.constant 0 : i32
    return %arg0, %c0_i32 : i32, i32
  }
  func.func @transform_1(%arg0: i32) -> (i32, i32) {
    %c0_i32 = arith.constant 0 : i32
    %c0_i32_0 = arith.constant 0 : i32
    %c0_i32_1 = arith.constant 0 : i32
    return %c0_i32, %c0_i32_0 : i32, i32
  }
  func.func @transform_2(%arg0: i32) -> (i32, i32) {
    %c0_i32 = arith.constant 0 : i32
    %c0_i32_0 = arith.constant 0 : i32
    %c0_i32_1 = arith.constant 0 : i32
    return %c0_i32, %c0_i32_0 : i32, i32
  }
  func.func @transform_3(%arg0: i32) -> (i32, i32) {
    %c0_i32 = arith.constant 0 : i32
    %c0_i32_0 = arith.constant 0 : i32
    %c0_i32_1 = arith.constant 0 : i32
    return %c0_i32, %c0_i32_0 : i32, i32
  }
  func.func @transform_4(%arg0: i32) -> (i32, i32) {
    %c0_i32 = arith.constant 0 : i32
    %c0_i32_0 = arith.constant 0 : i32
    return %arg0, %c0_i32 : i32, i32
  }
}

module attributes {stable_mosaic.version = 11 : i64} {
  func.func @_lm_head_kernel(%arg0: i32, %arg1: memref<16x32xf32, #tpu.memory_space<vmem>>, %arg2: memref<1x32xf32, #tpu.memory_space<vmem>>, %arg3: memref<32x64xbf16, #tpu.memory_space<vmem>>, %arg4: memref<16x64xf32, #tpu.memory_space<vmem>>) attributes {dimension_semantics = [#tpu.dimension_semantics<parallel>], iteration_bounds = array<i64: 1>, scalar_prefetch = 0 : i64, scratch_operands = 0 : i64, tpu.core_type = #tpu.core_type<tc>, window_params = [{transform_indices = @transform_0, window_bounds = array<i64: 16, 32>}, {pipeline_mode = #tpu.pipeline_mode<synchronous>, transform_indices = @transform_1, window_bounds = array<i64: 1, 32>}, {pipeline_mode = #tpu.pipeline_mode<synchronous>, transform_indices = @transform_2, window_bounds = array<i64: 32, 64>}, {transform_indices = @transform_3, window_bounds = array<i64: 16, 64>}]} {
    %c0 = arith.constant 0 : index
    %c0_0 = arith.constant 0 : index
    %0 = vector.load %arg1[%c0, %c0_0] : memref<16x32xf32, #tpu.memory_space<vmem>>, vector<16x32xf32>
    %1 = arith.mulf %0, %0 : vector<16x32xf32>
    %cst = arith.constant dense<0.000000e+00> : vector<16xf32>
    %2 = vector.multi_reduction <add>, %1, %cst [1] : vector<16x32xf32> to vector<16xf32>
    %3 = vector.shape_cast %2 : vector<16xf32> to vector<16x1xf32>
    %cst_1 = arith.constant 3.200000e+01 : f32
    %4 = vector.broadcast %cst_1 : f32 to vector<16x1xf32>
    %5 = arith.divf %3, %4 : vector<16x1xf32>
    %cst_2 = arith.constant 9.99999997E-7 : f32
    %6 = vector.broadcast %cst_2 : f32 to vector<16x1xf32>
    %7 = arith.addf %5, %6 : vector<16x1xf32>
    %8 = math.rsqrt %7 : vector<16x1xf32>
    %9 = vector.broadcast %8 : vector<16x1xf32> to vector<16x32xf32>
    %10 = arith.mulf %0, %9 : vector<16x32xf32>
    %c0_3 = arith.constant 0 : index
    %c0_4 = arith.constant 0 : index
    %11 = vector.load %arg2[%c0_3, %c0_4] : memref<1x32xf32, #tpu.memory_space<vmem>>, vector<1x32xf32>
    %12 = vector.broadcast %11 : vector<1x32xf32> to vector<16x32xf32>
    %13 = arith.mulf %10, %12 : vector<16x32xf32>
    %14 = arith.truncf %13 : vector<16x32xf32> to vector<16x32xbf16>
    %c0_5 = arith.constant 0 : index
    %c0_6 = arith.constant 0 : index
    %15 = vector.load %arg3[%c0_5, %c0_6] : memref<32x64xbf16, #tpu.memory_space<vmem>>, vector<32x64xbf16>
    %cst_7 = arith.constant dense<0.000000e+00> : vector<16x64xf32>
    %16 = tpu.matmul %14, %15, %cst_7 {dimension_numbers = #tpu.dot_dimension_numbers<[1], [0], [0], [1], [0, 0, 1, 1], [], []>} : vector<16x32xbf16>, vector<32x64xbf16>, vector<16x64xf32> -> vector<16x64xf32>
    %c0_8 = arith.constant 0 : index
    %c0_9 = arith.constant 0 : index
    %17 = vector.load %arg4[%c0_8, %c0_9] : memref<16x64xf32, #tpu.memory_space<vmem>>, vector<16x64xf32>
    tpu.vector_store %arg4[%c0_8, %c0_9], %16 {strides = array<i32>} : memref<16x64xf32, #tpu.memory_space<vmem>>, vector<16x64xf32>,
    return
  }
  func.func @transform_0(%arg0: i32) -> (i32, i32) {
    %c0_i32 = arith.constant 0 : i32
    %c0_i32_0 = arith.constant 0 : i32
    return %arg0, %c0_i32 : i32, i32
  }
  func.func @transform_1(%arg0: i32) -> (i32, i32) {
    %c0_i32 = arith.constant 0 : i32
    %c0_i32_0 = arith.constant 0 : i32
    %c0_i32_1 = arith.constant 0 : i32
    return %c0_i32, %c0_i32_0 : i32, i32
  }
  func.func @transform_2(%arg0: i32) -> (i32, i32) {
    %c0_i32 = arith.constant 0 : i32
    %c0_i32_0 = arith.constant 0 : i32
    %c0_i32_1 = arith.constant 0 : i32
    return %c0_i32, %c0_i32_0 : i32, i32
  }
  func.func @transform_3(%arg0: i32) -> (i32, i32) {
    %c0_i32 = arith.constant 0 : i32
    %c0_i32_0 = arith.constant 0 : i32
    return %arg0, %c0_i32 : i32, i32
  }
}

</mosaic_0001>

<bundles_post_ra>
// kernel: tile.11
= control target key start
LH: loop header
LB: loop body
LE: loop exit
PB: predicated region body
PF: predicated region fallthrough
CT: control target
= control target key end

     0   :  { %vm43_vm0 = vcmask 1047556   ;;  %vm45_vm1 = vcmask 64512   ;;  %s94_s22 = smov 8   ;;  %s95_s25 = smov 16   ;;  %vm55_vm2 = vcmask 261312   ;;  %vm65_vm3 = vcmask 195712   ;;  %s147_s0 = inlined_call_operand.vmem [shape: f32[8,4,8], index: 0, kind: input, shape index: {}]   ;;  %s148_s1 = inlined_call_operand.vmem [shape: f32[8,32], index: 1, kind: output, shape index: {}]  }
   0x1   :  { %v83_v0 = vld [vmem:[%s147_s0 + $0x1c] sm:$0xf]  ;;  %v84_v1 = vld [vmem:[%s147_s0 + $0x18] sm:$0xf]  ;;  %v85_v2 = vld [vmem:[%s147_s0 + $0x14] sm:$0xf] }
   0x2   :  { %9 = vst [vmem:[#allocation0 + $0x38] sm:$0xf] %v83_v0  ;;  %14 = vst [vmem:[#allocation0 + $0x30] sm:$0xf] %v84_v1  ;;  %v86_v3 = vld [vmem:[%s147_s0 + $0x10] sm:$0xf] }
   0x3   :  { %19 = vst [vmem:[#allocation0 + $0x28] sm:$0xf] %v85_v2  ;;  %v87_v4 = vld [vmem:[%s147_s0 + $0xc] sm:$0xf]  ;;  %v88_v5 = vld [vmem:[%s147_s0 + $0x8] sm:$0xf] }
   0x4   :  { %24 = vst [vmem:[#allocation0 + $0x20] sm:$0xf] %v86_v3  ;;  %29 = vst [vmem:[#allocation0 + $0x18] sm:$0xf] %v87_v4  ;;  %v89_v6 = vld [vmem:[%s147_s0 + $0x4] sm:$0xf] }
   0x5   :  { %34 = vst [vmem:[#allocation0 + $0x10] sm:$0xf] %v88_v5  ;;  %v39_v7 = vld [vmem:[%s147_s0] sm:$0xf]  ;;  %38 = vst [vmem:[#allocation0 + $0x8] sm:$0xf] %v89_v6 }
   0x6   :  { %40 = vst [vmem:[#allocation0] sm:$0xf] %v39_v7  ;;  %s93_s0 = smov 24   ;;  %vm75_vm4 = vcmask 130112  }
   0xb   :  { %v50_v8 = vld [vmem:[#allocation0 + $0x3] ss:$8 sm:$0xf0]   ;;  %v60_v9 = vld [vmem:[#allocation0 + $0x2] ss:$8 sm:$0xf0]  }
   0xc   :  { %v70_v14 = vld [vmem:[#allocation0 + $0x1] ss:$8 sm:$0xf0]   ;;  %v42_v17 = vld [vmem:[#allocation0] ss:$8 sm:$0xf0]  }
   0xd   :  { %v48_v10 = vld [vmem:[#allocation0 + $0x3] ss:$8 sm:$0xf]   ;;  %v58_v11 = vld [vmem:[#allocation0 + $0x2] ss:$8 sm:$0xf]  }
   0xe   :  { %v52_v12 = vsel %vm43_vm0, %v50_v8, %v48_v10  ;;  %v68_v13 = vld [vmem:[#allocation0 + $0x1] ss:$8 sm:$0xf]   ;;  %v41_v16 = vld [vmem:[#allocation0] ss:$8 sm:$0xf]   ;;  %v62_v18 = vsel %vm43_vm0, %v60_v9, %v58_v11 }
   0xf   :  { %53 = vrot.lane.b32.xlu0 %v52_v12, %s93_s0  ;;  %v72_v15 = vsel %vm43_vm0, %v70_v14, %v68_v13  ;;  %v44_v19 = vsel %vm43_vm0, %v42_v17, %v41_v16 }
  0x10   :  { %73 = vrot.lane.b32.xlu1 %v72_v15, %s94_s22  ;;  %46 = vst.msk [vmem:[%s148_s1] sm:$0xff] %vm45_vm1, %v44_v19  }
  0x13   :  { %63 = vrot.lane.b32.xlu0 %v62_v18, %s95_s25 }
  0x81   :  { %v54_v20 = vpop.permute.xlu0 %53  }
  0x82   :  { %56 = vst.msk [vmem:[%s148_s1] sm:$0xff] %vm55_vm2, %v54_v20   ;;  %v74_v21 = vpop.permute.xlu1 %73  }
  0x85   :  { %v64_v22 = vpop.permute.xlu0 %63  }
  0x86   :  { %66 = vst.msk [vmem:[%s148_s1] sm:$0xff] %vm65_vm3, %v64_v22  }
  0x87   :  { %76 = vst.msk [vmem:[%s148_s1] sm:$0xff] %vm75_vm4, %v74_v21  }

// kernel: forward.9
= control target key start
LH: loop header
LB: loop body
LE: loop exit
PB: predicated region body
PF: predicated region fallthrough
CT: control target
= control target key end

     0   :  { %vm20_vm0 = vcmask 261120   ;;  %s219_s0 = inlined_call_operand.vmem [shape: f32[16,32], index: 0, kind: input, shape index: {}]   ;;  %s220_s1 = inlined_call_operand.vmem [shape: f32[1,32], index: 1, kind: input, shape index: {}]   ;;  %s221_s2 = inlined_call_operand.vmem [shape: bf16[32,64], index: 2, kind: input, shape index: {}]   ;;  %s222_s3 = inlined_call_operand.hbm [shape: f32[16,64], index: 3, kind: output, shape index: {}]  }
   0x1   :  { %v16_v0 = vld [vmem:[%s219_s0] sm:$0xff]  ;;  %v17_v1 = vld [vmem:[%s219_s0 + $0x8] sm:$0xff] }
   0x2   :  { %v18_v2 = vmul.f32 %v16_v0, %v16_v0  ;;  %v19_v3 = vmul.f32 %v17_v1, %v17_v1 }
   0x3   :  { %8 = vsyncpa [#allocation3], 0  ;;  %v145_v6 = vld [vmem:[%s221_s2 + $0x8] sm:$0xff]   ;;  %v173_v7 = vmov 0.0   ;;  %vm174_vm1 = vmmov 0   ;;  %v146_v8 = vld [vmem:[%s221_s2] sm:$0xff]  }
   0x4   :  { %v21_v4 = vsel %vm20_vm0, %v18_v2, 0.0  ;;  %v24_v5 = vsel %vm20_vm0, %v19_v3, 0.0  ;;  %132 = vmatprep.subr.bf16.mxu0 %v173_v7  ;;  %136 = vmatprep.mubr.msk.bf16.mxu0 %vm174_vm1, %v173_v7  ;;  %v125_v18 = vld [vmem:[%s220_s1] ss:$0 sm:$0xff]  ;;  %vm106_vm2 = vcmask 523264   ;;  %s175_s2 = smov [#allocation2]  }
   0x5   :  { %22 = vadd.xlane.f32.xlu0 %v21_v4  ;;  %133 = vmatpush3.bf16.msra.mxu0 %v145_v6  ;;  %s114_s21 = sshll.u32 %s175_s2, 4  ;;  %s115_s21 = int_to_ptr.vmem [resolvable:$true] %s114_s21 }
   0x6   :  { %134 = vmatprep.subr.bf16.mxu0 %v173_v7  ;;  %s151_s22 = scalar_lea.vmem %s115_s21, 256  ;;  %p156_p1 = scmp.lt.s32.totalorder %s115_s21, %s115_s21 }
   0x7   :  { %p152_p0 = scmp.ne.s32.totalorder %s115_s21, %s151_s22  ;;  %p157_p2 = scmp.lt.s32.totalorder %s151_s22, %s151_s22 }
   0x9   :  { %25 = vadd.xlane.f32.xlu0 %v24_v5  ;;  %135 = vmatpush3.bf16.msra.mxu0 %v146_v8  ;;  %p158_p3 = por %p157_p2, %p156_p1 }
   0xb   :  { %p159_p4 = pnand %p158_p3, %p152_p0 }
  0x8e   :  { %v23_v9 = vpop.xlane.xlu0 %22 }
  0x8f   :  { %v28_v10 = vmul.f32 0.03125, %v23_v9 }
  0x91   :  { %v30_v11 = vadd.f32 1e-06, %v28_v10 }
  0x92   :  { %v26_v12 = vpop.xlane.xlu0 %25 }
  0x93   :  { %147 = vrsqrt.f32 %v30_v11  ;;  %v29_v13 = vmul.f32 0.03125, %v26_v12 }
  0x95   :  { %v31_v14 = vadd.f32 1e-06, %v29_v13 }
  0x97   :  { %149 = vrsqrt.f32 %v31_v14 }
  0xa0   :  { %v148_v15 = vpop.eup %147 }
  0xa1   :  { %v34_v16 = vmul.f32 %v148_v15, %v16_v0 }
  0xa3   :  { %v43_v20 = vmul.f32 %v125_v18, %v34_v16 }
  0xa4   :  { %v150_v17 = vpop.eup %149 }
  0xa5   :  { %v35_v19 = vmul.f32 %v150_v17, %v17_v1 }
  0xa7   :  { %v44_v21 = vmul.f32 %v125_v18, %v35_v19 }
  0xa9   :  { %v45_v22 = vpack.c.bf16 %v44_v21, %v43_v20 }
  0xab   :  { %137 = vmatmul.mubr.msk.bf16.vlgmr.msra.gmra.mxu0 %vm20_vm0, %v45_v22 }
 0x16b   :  { %v99_v23 = vpop.f32.mrf.mxu0 }
 0x16c   :  { %107 = vst.msk [vmem:[#allocation2] sm:$0xff] %vm106_vm2, %v99_v23 }
 0x16d   :  { %v138_v24 = vpop.f32.mrf.mxu0 }
 0x16f   :  { %v102_v25 = vpop.f32.mrf.mxu0 }
 0x170   :  { %108 = vst.msk [vmem:[#allocation2 + $0x8] sm:$0xff] %vm106_vm2, %v102_v25 }
 0x171   :  { %v139_v26 = vpop.f32.mrf.mxu0 }
 0x172   :  { %162 = shalt.err (!%p159_p4)
}
 0x173   :  { %s176_s1 = smov 128   ;;  %s177_s23 = smov 8  }
 0x174   :  { %120 = dma.vmem_to_hbm [thread:$0]  %s115_s21, 256, %s222_s3, [#allocation3], %s176_s1, %s176_s1, %s177_s23  }
 0x175   :  { %171 = dma.done.wait [#allocation3], 256  }
 0x176   :  { %172 = vsyncadd [#allocation3], 4294967040 }
 0x177   :  { %124 = vsyncpa [#allocation3], 1 }

// kernel: forward.6
= control target key start
LH: loop header
LB: loop body
LE: loop exit
PB: predicated region body
PF: predicated region fallthrough
CT: control target
= control target key end

     0   :  { %vm22_vm0 = vcmask 261120   ;;  %v321_v6 = vmov 0.0   ;;  %vm322_vm1 = vmmov 0   ;;  %s323_s12 = smov 64   ;;  %s411_s0 = inlined_call_operand.vmem [shape: f32[16,32], index: 0, kind: input, shape index: {}]   ;;  %s412_s2 = inlined_call_operand.vmem [shape: bf16[32,128], index: 2, kind: input, shape index: {}]   ;;  %s413_s1 = inlined_call_operand.vmem [shape: f32[1,32], index: 1, kind: input, shape index: {}]   ;;  %s414_s3 = inlined_call_operand.vmem [shape: bf16[128,32], index: 3, kind: input, shape index: {}]   ;;  %s415_s4 = inlined_call_operand.vmem [shape: f32[16,32], index: 4, kind: output, shape index: {}]  }
   0x1   :  { %v352_v0 = vld [vmem:[%s411_s0] sm:$0xff]  ;;  %v357_v1 = vld [vmem:[%s411_s0 + $0x8] sm:$0xff]  ;;  %268 = vmatprep.subr.bf16.mxu0 %v321_v6  ;;  %272 = vmatprep.mubr.msk.bf16.mxu0 %vm322_vm1, %v321_v6  ;;  %v301_v23 = vld [vmem:[%s414_s3 + $0x38] sm:$0xff]  }
   0x2   :  { %v20_v2 = vmul.f32 %v352_v0, %v352_v0  ;;  %v21_v3 = vmul.f32 %v357_v1, %v357_v1  ;;  %v299_v7 = vld [vmem:[%s412_s2 + $0x8] sm:$0xff]   ;;  %276 = vmatprep.subr.bf16.mxu1 %v321_v6  ;;  %292 = vmatprep.mubr.msk.bf16.mxu1 %vm322_vm1, %v321_v6  ;;  %v300_v8 = vld [vmem:[%s412_s2] sm:$0xff]   ;;  %v302_v24 = vld [vmem:[%s414_s3 + $0x30] sm:$0xff]  }
   0x3   :  { %269 = vmatpush3.bf16.msra.mxu0 %v299_v7  ;;  %v242_v18 = vld [vmem:[%s413_s1] ss:$0 sm:$0xff]  ;;  %277 = vmatpush3.bf16.msra.mxu1 %v301_v23  ;;  %v303_v25 = vld [vmem:[%s414_s3 + $0x28] sm:$0xff]   ;;  %v305_v27 = vld [vmem:[%s414_s3 + $0x18] sm:$0xff]  }
   0x4   :  { %v23_v4 = vsel %vm22_vm0, %v20_v2, 0.0  ;;  %v26_v5 = vsel %vm22_vm0, %v21_v3, 0.0  ;;  %270 = vmatprep.subr.bf16.mxu0 %v321_v6  ;;  %278 = vmatprep.subr.bf16.mxu1 %v321_v6  ;;  %v304_v26 = vld [vmem:[%s414_s3 + $0x20] sm:$0xff]   ;;  %v306_v28 = vld [vmem:[%s414_s3 + $0x10] sm:$0xff]   ;;  %v307_v29 = vld [vmem:[%s414_s3 + $0x8] sm:$0xff]  }
   0x5   :  { %24 = vadd.xlane.f32.xlu0 %v23_v4  ;;  %v308_v30 = vld [vmem:[%s414_s3] sm:$0xff]  }
   0x7   :  { %271 = vmatpush3.bf16.msra.mxu0 %v300_v8  ;;  %279 = vmatpush3.bf16.msra.mxu1 %v302_v24 }
   0x8   :  { %280 = vmatprep.subr.bf16.mxu1 %v321_v6 }
   0x9   :  { %27 = vadd.xlane.f32.xlu0 %v26_v5 }
   0xb   :  { %281 = vmatpush3.bf16.msra.mxu1 %v303_v25 }
   0xc   :  { %282 = vmatprep.subr.bf16.mxu1 %v321_v6 }
   0xf   :  { %283 = vmatpush3.bf16.msra.mxu1 %v304_v26 }
  0x10   :  { %284 = vmatprep.subr.bf16.mxu1 %v321_v6 }
  0x13   :  { %285 = vmatpush3.bf16.msra.mxu1 %v305_v27 }
  0x14   :  { %286 = vmatprep.subr.bf16.mxu1 %v321_v6 }
  0x17   :  { %287 = vmatpush3.bf16.msra.mxu1 %v306_v28 }
  0x18   :  { %288 = vmatprep.subr.bf16.mxu1 %v321_v6 }
  0x1b   :  { %289 = vmatpush3.bf16.msra.mxu1 %v307_v29 }
  0x1c   :  { %290 = vmatprep.subr.bf16.mxu1 %v321_v6 }
  0x1f   :  { %291 = vmatpush3.bf16.msra.mxu1 %v308_v30 }
  0x8e   :  { %v25_v9 = vpop.xlane.xlu0 %24 }
  0x8f   :  { %v30_v10 = vmul.f32 0.03125, %v25_v9 }
  0x91   :  { %v32_v11 = vadd.f32 1e-06, %v30_v10 }
  0x92   :  { %v28_v12 = vpop.xlane.xlu0 %27 }
  0x93   :  { %309 = vrsqrt.f32 %v32_v11  ;;  %v31_v13 = vmul.f32 0.03125, %v28_v12 }
  0x95   :  { %v33_v14 = vadd.f32 1e-06, %v31_v13 }
  0x97   :  { %311 = vrsqrt.f32 %v33_v14 }
  0xa0   :  { %v310_v15 = vpop.eup %309 }
  0xa1   :  { %v36_v16 = vmul.f32 %v310_v15, %v352_v0 }
  0xa3   :  { %v45_v20 = vmul.f32 %v242_v18, %v36_v16 }
  0xa4   :  { %v312_v17 = vpop.eup %311 }
  0xa5   :  { %v37_v19 = vmul.f32 %v312_v17, %v357_v1 }
  0xa7   :  { %v46_v21 = vmul.f32 %v242_v18, %v37_v19 }
  0xa9   :  { %v47_v22 = vpack.c.bf16 %v46_v21, %v45_v20 }
  0xab   :  { %273 = vmatmul.mubr.msk.bf16.vlgmr.msra.gmra.mxu0 %vm22_vm0, %v47_v22 }
 0x16b   :  { %v101_v31 = vpop.f32.mrf.mxu0 }
 0x16c   :  { %108 = vrot.lane.b32.xlu1 %v101_v31, %s323_s12  ;;  %v246_v35 = vmul.f32 -1.442695, %v101_v31 }
 0x16d   :  { %v274_v32 = vpop.f32.mrf.mxu0 }
 0x16e   :  { %313 = vpow2.f32 %v246_v35 }
 0x16f   :  { %v104_v33 = vpop.f32.mrf.mxu0 }
 0x170   :  { %110 = vrot.lane.b32.xlu1 %v104_v33, %s323_s12  ;;  %v247_v36 = vmul.f32 -1.442695, %v104_v33 }
 0x171   :  { %v275_v34 = vpop.f32.mrf.mxu0 }
 0x172   :  { %315 = vpow2.f32 %v247_v36 }
 0x17b   :  { %v314_v37 = vpop.eup %313 }
 0x17c   :  { %v118_v39 = vadd.f32 1.0, %v314_v37 }
 0x17e   :  { %317 = vrcp.f32 %v118_v39 }
 0x17f   :  { %v316_v38 = vpop.eup %315 }
 0x180   :  { %v119_v40 = vadd.f32 1.0, %v316_v38 }
 0x182   :  { %319 = vrcp.f32 %v119_v40 }
 0x18b   :  { %v318_v41 = vpop.eup %317 }
 0x18c   :  { %v124_v44 = vmul.f32 %v318_v41, %v101_v31 }
 0x18f   :  { %v320_v42 = vpop.eup %319 }
 0x190   :  { %v125_v45 = vmul.f32 %v320_v42, %v104_v33 }
 0x1de   :  { %v109_v43 = vpop.permute.xlu1 %108 }
 0x1df   :  { %v126_v47 = vmul.f32 %v124_v44, %v109_v43 }
 0x1e2   :  { %v111_v46 = vpop.permute.xlu1 %110 }
 0x1e3   :  { %v127_v48 = vmul.f32 %v125_v45, %v111_v46 }
 0x1e5   :  { %v128_v49 = vpack.c.bf16 %v127_v48, %v126_v47 }
 0x1e7   :  { %293 = vmatmul.mubr.bf16.vlgmr.msra.gmra.mxu1 %v128_v49 }
 0x2a7   :  { %v227_v50 = vpop.f32.mrf.mxu1 }
 0x2a8   :  { %v234_v51 = vadd.f32 %v227_v50, %v352_v0 }
 0x2a9   :  { %v294_v52 = vpop.f32.mrf.mxu1 }
 0x2aa   :  { %236 = vst.msk [vmem:[%s415_s4] sm:$0xff] %vm22_vm0, %v234_v51 }
 0x2ab   :  { %v230_v53 = vpop.f32.mrf.mxu1 }
 0x2ac   :  { %v235_v54 = vadd.f32 %v230_v53, %v357_v1 }
 0x2ad   :  { %v295_v55 = vpop.f32.mrf.mxu1 }
 0x2ae   :  { %237 = vst.msk [vmem:[%s415_s4 + $0x8] sm:$0xff] %vm22_vm0, %v235_v54 }

// kernel: forward.5
= control target key start
LH: loop header
LB: loop body
LE: loop exit
PB: predicated region body
PF: predicated region fallthrough
CT: control target
= control target key end

     0   :  { %s1542_s25 = smov 0   ;;  %s1733_s0 = inlined_call_operand.vmem [shape: f32[2,8,32], index: 0, kind: input, shape index: {}]   ;;  %s1734_s1 = inlined_call_operand.vmem [shape: f32[1,32], index: 1, kind: input, shape index: {}]   ;;  %s1735_s2 = inlined_call_operand.vmem [shape: bf16[32,32], index: 2, kind: input, shape index: {}]   ;;  %s1736_s3 = inlined_call_operand.vmem [shape: bf16[32,32], index: 3, kind: input, shape index: {}]   ;;  %s1737_s4 = inlined_call_operand.vmem [shape: bf16[32,32], index: 4, kind: input, shape index: {}]   ;;  %s1738_s5 = inlined_call_operand.vmem [shape: bf16[32,32], index: 5, kind: input, shape index: {}]   ;;  %s1739_s6 = inlined_call_operand.vmem [shape: f32[32,32], index: 6, kind: input, shape index: {}]   ;;  %s1740_s7 = inlined_call_operand.vmem [shape: f32[8,32], index: 7, kind: input, shape index: {}]   ;;  %s1741_s8 = inlined_call_operand.vmem [shape: f32[8,32], index: 8, kind: input, shape index: {}]   ;;  %s1742_s9 = inlined_call_operand.vmem [shape: f32[32,8], index: 9, kind: input, shape index: {}]   ;;  %s1743_s10 = inlined_call_operand.vmem [shape: f32[8,32], index: 10, kind: input, shape index: {}]   ;;  %s1744_s11 = inlined_call_operand.vmem [shape: f32[32,32], index: 11, kind: input, shape index: {}]   ;;  %s1745_s12 = inlined_call_operand.vmem [shape: f32[32,8], index: 12, kind: input, shape index: {}]   ;;  %s1746_s13 = inlined_call_operand.vmem [shape: f32[2,8,32], index: 13, kind: output, shape index: {}]  }
   0x1 LB: > { %s1268_s26 = sadd.s32 4294967295, %s1468_s25   ;;  %p1272_p0 = scmp.ge.s32.totalorder %s1468_s25, 1  ;;  %s1468_s25 = sphi %s1542_s25, %s23_s25  }
   0x2   : > { %p386_p1 = scmp.lt.s32.totalorder %s1468_s25, 3 }
   0x4   : > { %p387_p2 = pnand %p1272_p0, %p386_p1 }
   0x5   : > { %p428_p3 = scmp.lt.s32.totalorder (!%p387_p2), %s1268_s26, 1 }
   0x6   : > { %390 = sbr.rel (%p387_p2) target bundleno = 1743 (0x6cf), region = 72 }
   0xb   : > { %s1748_s26 = smov (!%p428_p3, %s1268_s26), 1  ;;  %vm439_vm0 = vcmask 261120   ;;  %v1436_v3 = vld [vmem:[%s1735_s2 + $0x8] sm:$0xff]   ;;  %v1470_v5 = vmov 0.0   ;;  %v1438_v6 = vld [vmem:[%s1735_s2] sm:$0xff]   ;;  %vm1471_vm1 = vmmov 0  }
   0xc   : > { %s1273_s27 = sshll.u32 %s1748_s26, 3  ;;  %v1437_v4 = vld [vmem:[%s1736_s3 + $0x8] sm:$0xff]   ;;  %1339 = vmatprep.subr.bf16.mxu0 %v1470_v5  ;;  %1347 = vmatprep.subr.bf16.mxu1 %v1470_v5  ;;  %v1439_v7 = vld [vmem:[%s1736_s3] sm:$0xff]   ;;  %v634_v17 = vld [vmem:[%s1739_s6 + $0x18] sm:$0xff]  ;;  %vm1014_vm2 = vcmask 1043456   ;;  %vm790_vm3 = vcmask 64512  }
   0xd   : > { %s431_s30 = scalar_lea.vmem %s1733_s0, %s1273_s27  ;;  %1340 = vmatpush3.bf16.msra.mxu0 %v1436_v3  ;;  %1348 = vmatpush3.bf16.msra.mxu1 %v1437_v4  ;;  %v1275_v12 = vld [vmem:[%s1734_s1] ss:$0 sm:$0xff]  ;;  %v1440_v15 = vld [vmem:[%s1737_s4 + $0x8] sm:$0xff]   ;;  %v633_v19 = vld [vmem:[%s1739_s6 + $0x10] sm:$0xff]  ;;  %s435_s16 = scalar_lea.vmem %s1746_s13, %s1273_s27 }
   0xe   : > { %v1558_v0 = vld [vmem:[%s431_s30] sm:$0xff]  ;;  %1341 = vmatprep.subr.bf16.mxu0 %v1470_v5  ;;  %1349 = vmatprep.subr.bf16.mxu1 %v1470_v5  ;;  %v632_v20 = vld [vmem:[%s1739_s6 + $0x8] sm:$0xff]  ;;  %v788_v51 = vld [vmem:[%s1742_s9 + $0x10] sm:$0xff] }
   0xf   : > { %v438_v1 = vmul.f32 %v1558_v0, %v1558_v0  ;;  %1343 = vmatprep.mubr.msk.bf16.mxu0 %vm1471_vm1, %v1470_v5  ;;  %1351 = vmatprep.mubr.msk.bf16.mxu1 %vm1471_vm1, %v1470_v5  ;;  %v1441_v18 = vld [vmem:[%s1737_s4] sm:$0xff]   ;;  %v787_v49 = vld [vmem:[%s1742_s9 + $0x8] sm:$0xff]  ;;  %v789_v53 = vld [vmem:[%s1742_s9 + $0x18] sm:$0xff] }
  0x10   : > { %v631_v21 = vld [vmem:[%s1739_s6] sm:$0xff]  ;;  %v1655_v55 = vld [vmem:[%s1744_s11 + $0x8] sm:$0xff]  ;;  %v1667_v61 = vld [vmem:[%s1744_s11 + $0x18] sm:$0xff] }
  0x11   : > { %v440_v2 = vsel %vm439_vm0, %v438_v1, 0.0  ;;  %1342 = vmatpush3.bf16.msra.mxu0 %v1438_v6  ;;  %1350 = vmatpush3.bf16.msra.mxu1 %v1439_v7  ;;  %v786_v36 = vld [vmem:[%s1742_s9] sm:$0xff]  ;;  %v1672_v62 = vld [vmem:[%s1744_s11 + $0x10] sm:$0xff] }
  0x12   : > { %441 = vadd.xlane.f32.xlu0 %v440_v2  ;;  %1355 = vmatprep.subr.bf16.mxu0 %v1470_v5  ;;  %v628_v37 = vld [vmem:[%s1740_s7] sm:$0xff] }
  0x13   : > { %1363 = vmatprep.subr.mxu1 %v1470_v5  ;;  %v629_v38 = vld [vmem:[%s1741_s8] sm:$0xff] }
  0x14   : > { %v1660_v56 = vld [vmem:[%s1744_s11] sm:$0xff] }
  0x9b   : > { %v442_v8 = vpop.xlane.xlu0 %441 }
  0x9c   : > { %v444_v9 = vmul.f32 0.03125, %v442_v8  ;;  %v961_v8 = vld [vmem:[%s1745_s12] sm:$0xff] }
  0x9e   : > { %v445_v10 = vadd.f32 1e-06, %v444_v9 }
  0xa0   : > { %1444 = vrsqrt.f32 %v445_v10 }
  0xad   : > { %v1445_v11 = vpop.eup %1444 }
  0xae   : > { %v447_v13 = vmul.f32 %v1445_v11, %v1558_v0  ;;  %v964_v11 = vld [vmem:[%s1745_s12 + $0x18] sm:$0xff] }
  0xb0   : > { %v455_v14 = vmul.f32 %v1275_v12, %v447_v13 }
  0xb2   : > { %v456_v16 = vpack.c.bf16 %v455_v14, %v455_v14 }
  0xb4   : > { %1344 = vmatmul.mubr.msk.bf16.vlgmr.msra.gmra.mxu0 %vm439_vm0, %v456_v16  ;;  %1352 = vmatmul.mubr.msk.bf16.vlgmr.msra.gmra.mxu1 %vm439_vm0, %v456_v16 }
  0xb5   : > { %1356 = vmatpush3.bf16.msra.mxu0 %v1440_v15  ;;  %1359 = vmatprep.mubr.msk.bf16.mxu0 %vm1471_vm1, %v1470_v5  ;;  %v962_v15 = vld [vmem:[%s1745_s12 + $0x8] sm:$0xff] }
  0xb6   : > { %1357 = vmatprep.subr.bf16.mxu0 %v1470_v5  ;;  %1364 = vmatpush3.msra.mxu1 %v634_v17 }
  0xb7   : > { %1365 = vmatprep.subr.mxu1 %v1470_v5  ;;  %1371 = vmatprep.mubr.msk.f32.mxu1 %vm1471_vm1, %v1470_v5 }
  0xb8   : > { %1366 = vmatpush3.msra.mxu1 %v633_v19 }
  0xb9   : > { %1358 = vmatpush3.bf16.msra.mxu0 %v1441_v18  ;;  %1367 = vmatprep.subr.mxu1 %v1470_v5 }
  0xba   : > { %1374 = vmatprep.subr.mxu0 %v1470_v5  ;;  %1368 = vmatpush3.msra.mxu1 %v632_v20 }
  0xbb   : > { %1369 = vmatprep.subr.mxu1 %v1470_v5 }
  0xbc   : > { %1360 = vmatmul.mubr.msk.bf16.vlgmr.msra.gmra.mxu0 %vm439_vm0, %v456_v16  ;;  %1370 = vmatpush3.msra.mxu1 %v631_v21 }
  0xbd   : > { %1375 = vmatpush3.msra.mxu0 %v634_v17  ;;  %1382 = vmatprep.mubr.msk.f32.mxu0 %vm1471_vm1, %v1470_v5 }
  0xbe   : > { %1376 = vmatprep.subr.mxu0 %v1470_v5 }
  0xbf   : > { %1377 = vmatpush3.msra.mxu0 %v633_v19 }
  0xc0   : > { %1378 = vmatprep.subr.mxu0 %v1470_v5 }
  0xc1   : > { %1379 = vmatpush3.msra.mxu0 %v632_v20  ;;  %v963_v20 = vld [vmem:[%s1745_s12 + $0x10] sm:$0xff] }
  0xc2   : > { %1380 = vmatprep.subr.mxu0 %v1470_v5 }
  0xc3   : > { %1381 = vmatpush3.msra.mxu0 %v631_v21 }
 0x174   : > { %v510_v22 = vpop.f32.mrf.mxu0  ;;  %v566_v23 = vpop.f32.mrf.mxu1 }
 0x175   : > { %1372 = vmatmul.mubr.msk.f32.vlgmr.msra.gmra.mxu1 %vm439_vm0, %v510_v22  ;;  %1383 = vmatmul.mubr.msk.f32.vlgmr.msra.gmra.mxu0 %vm439_vm0, %v566_v23  ;;  %v630_v41 = vmul.f32 %v628_v37, %v510_v22  ;;  %v710_v42 = vmul.f32 %v628_v37, %v566_v23 }
 0x176   : > { %v1345_v24 = vpop.f32.mrf.mxu0  ;;  %v1353_v25 = vpop.f32.mrf.mxu1  ;;  %1387 = vmatprep.mubr.msk.f32.mxu1 %vm790_vm3, %v786_v36 }
 0x178   : > { %v513_v26 = vpop.f32.mrf.mxu0  ;;  %v569_v27 = vpop.f32.mrf.mxu1 }
 0x17a   : > { %v1346_v28 = vpop.f32.mrf.mxu0  ;;  %v1354_v29 = vpop.f32.mrf.mxu1 }
 0x17c   : > { %v622_v30 = vpop.f32.mrf.mxu0 }
 0x17d   : > { %v1007_v31 = vpack.c.bf16 %v622_v30, %v622_v30 }
 0x17e   : > { %v1361_v32 = vpop.f32.mrf.mxu0 }
 0x17f   : > { %v1016_v33 = vsel %vm1014_vm2, %v1007_v31, 0  ;;  %1425 = vmatprep.subr.msk.bf16.mxu0 %vm1014_vm2, %v1007_v31 }
 0x180   : > { %v625_v34 = vpop.f32.mrf.mxu0  ;;  %1400 = vmatpush3.bf16.msra.mxu0 %v1016_v33 }
 0x181   : > { %1405 = vmatprep.subr.mxu0 %v1470_v5 }
 0x182   : > { %v1362_v35 = vpop.f32.mrf.mxu0 }
 0x235   : > { %v704_v39 = vpop.f32.mrf.mxu1  ;;  %v780_v40 = vpop.f32.mrf.mxu0 }
 0x236   : > { %v708_v43 = vmul.f32 %v704_v39, %v629_v38  ;;  %v784_v44 = vmul.f32 %v780_v40, %v629_v38 }
 0x237   : > { %v1373_v45 = vpop.f32.mrf.mxu1  ;;  %v1384_v46 = vpop.f32.mrf.mxu0 }
 0x238   : > { %v709_v47 = vadd.f32 %v708_v43, %v630_v41  ;;  %v785_v48 = vadd.f32 %v784_v44, %v710_v42 }
 0x23a   : > { %v898_v50 = vpack.c.bf16 %v785_v48, %v785_v48  ;;  %1385 = vmatprep.subr.mxu1 %v709_v47  ;;  %v1442_v48 = vld [vmem:[%s1738_s5 + $0x8] sm:$0xff]  }
 0x23b   : > { %1386 = vmatpush3.msra.mxu1 %v709_v47 }
 0x23c   : > { %1388 = vmatmul.mubr.msk.f32.vlgmr.msra.gmra.mxu1 %vm790_vm3, %v787_v49  ;;  %1424 = vmatprep.subr.msk.bf16.mxu1 %vm439_vm0, %v898_v50  ;;  %v906_v52 = vsel %vm439_vm0, %v898_v50, 0 }
 0x23d   : > { %1394 = vmatpush3.bf16.xpose.msra.mxu1 %v906_v52  ;;  %1390 = vmatprep.mubr.msk.f32.mxu1 %vm790_vm3, %v788_v51 }
 0x23e   : > { %1416 = vmatprep.subr.bf16.mxu1 %v1470_v5 }
 0x240   : > { %1391 = vmatmul.mubr.msk.f32.gmra.mxu1 %vm790_vm3, %v789_v53 }
 0x2fc   : > { %v1389_v54 = vpop.f32.mrf.mxu1 }
 0x2fd   : > { %v893_v58 = vmul.f32 %v1389_v54, %v1655_v55 }
 0x2fe   : > { %v869_v57 = vpop.f32.mrf.mxu1 }
 0x2ff   : > { %v892_v59 = vmul.f32 %v1660_v56, %v869_v57 }
 0x300   : > { %v1392_v60 = vpop.f32.mrf.mxu1 }
 0x301   : > { %v896_v63 = vpack.c.bf16 %v893_v58, %v892_v59  ;;  %v895_v2 = vmul.f32 %v1392_v60, %v1667_v61 }
 0x302   : > { %v879_v1 = vpop.f32.mrf.mxu1 }
 0x303   : > { %v894_v3 = vmul.f32 %v1672_v62, %v879_v1  ;;  %1395 = vmatprep.mubr.msk.bf16.mxu1 %vm439_vm0, %v896_v63 }
 0x305   : > { %v897_v4 = vpack.c.bf16 %v895_v2, %v894_v3 }
 0x307   : > { %1396 = vmatmul.mubr.msk.bf16.vlgmr.msra.gmra.mxu1 %vm439_vm0, %v897_v4 }
 0x308   : > { %1420 = vmatprep.mubr.msk.bf16.mxu1 %vm1471_vm1, %v1470_v5  ;;  %1417 = vmatpush3.bf16.msra.mxu1 %v1442_v48 }
 0x309   : > { %1418 = vmatprep.subr.bf16.mxu1 %v1470_v5 }
 0x3c7   : > { %v1397_v6 = vpop.f32.mrf.mxu1 }
 0x3c8   : > { %v959_v16 = vmul.f32 0.35355338, %v1397_v6 }
 0x3c9   : > { %v942_v7 = vpop.f32.mrf.mxu1 }
 0x3ca   : > { %v957_v9 = vmul.f32 0.35355338, %v942_v7  ;;  %v967_v24 = vadd.f32 %v963_v20, %v959_v16 }
 0x3cb   : > { %v1398_v10 = vpop.f32.mrf.mxu1 }
 0x3cc   : > { %v960_v12 = vmul.f32 0.35355338, %v1398_v10  ;;  %v965_v13 = vadd.f32 %v961_v8, %v957_v9  ;;  %v975_v25 = vsel %vm790_vm3, %v967_v24, -inf }
 0x3cd   : > { %v945_v14 = vpop.f32.mrf.mxu1 }
 0x3ce   : > { %v958_v17 = vmul.f32 0.35355338, %v945_v14  ;;  %v969_v18 = vsel %vm790_vm3, %v965_v13, -inf  ;;  %v968_v19 = vadd.f32 %v964_v11, %v960_v12 }
 0x3cf   : > { %970 = vmax.xlane.f32.xlu0 %v969_v18 }
 0x3d0   : > { %v966_v21 = vadd.f32 %v962_v15, %v958_v17  ;;  %v978_v22 = vsel %vm790_vm3, %v968_v19, -inf }
 0x3d2   : > { %v972_v23 = vsel %vm790_vm3, %v966_v21, -inf }
 0x3d3   : > { %979 = vmax.xlane.f32.xlu0 %v978_v22  ;;  %973 = vmax.xlane.f32.xlu1 %v972_v23 }
 0x3d7   : > { %976 = vmax.xlane.f32.xlu1 %v975_v25 }
 0x458   : > { %v971_v26 = vpop.xlane.xlu0 %970 }
 0x459   : > { %v981_v27 = vsub.f32 %v965_v13, %v971_v26 }
 0x45b   : > { %v985_v28 = vmul.f32 1.442695, %v981_v27 }
 0x45c   : > { %v980_v29 = vpop.xlane.xlu0 %979  ;;  %v974_v30 = vpop.xlane.xlu1 %973 }
 0x45d   : > { %v984_v31 = vsub.f32 %v968_v19, %v980_v29  ;;  %v982_v32 = vsub.f32 %v966_v21, %v974_v30  ;;  %1446 = vpow2.f32 %v985_v28 }
 0x45f   : > { %v991_v33 = vmul.f32 1.442695, %v984_v31  ;;  %v987_v34 = vmul.f32 1.442695, %v982_v32 }
 0x460   : > { %v977_v35 = vpop.xlane.xlu1 %976 }
 0x461   : > { %1448 = vpow2.f32 %v991_v33  ;;  %v983_v36 = vsub.f32 %v967_v24, %v977_v35 }
 0x462   : > { %1450 = vpow2.f32 %v987_v34 }
 0x463   : > { %v989_v37 = vmul.f32 1.442695, %v983_v36 }
 0x465   : > { %1452 = vpow2.f32 %v989_v37 }
 0x46a   : > { %v1447_v38 = vpop.eup %1446 }
 0x46b   : > { %v993_v47 = vsel %vm790_vm3, %v1447_v38, 0.0 }
 0x46e   : > { %v1449_v39 = vpop.eup %1448 }
 0x46f   : > { %v1451_v40 = vpop.eup %1450  ;;  %v1002_v41 = vsel %vm790_vm3, %v1449_v39, 0.0 }
 0x470   : > { %1003 = vadd.xlane.f32.xlu1 %v1002_v41  ;;  %v1005_v42 = vpack.c.bf16 %v1451_v40, %v1447_v38  ;;  %v996_v44 = vsel %vm790_vm3, %v1451_v40, 0.0 }
 0x472   : > { %v1453_v43 = vpop.eup %1452  ;;  %1401 = vmatprep.mubr.msk.bf16.mxu0 %vm790_vm3, %v1005_v42 }
 0x473   : > { %v999_v45 = vsel %vm790_vm3, %v1453_v43, 0.0  ;;  %v1006_v46 = vpack.c.bf16 %v1449_v39, %v1453_v43 }
 0x474   : > { %997 = vadd.xlane.f32.xlu1 %v996_v44  ;;  %1000 = vadd.xlane.f32.xlu0 %v999_v45 }
 0x475   : > { %1402 = vmatmul.mubr.msk.bf16.vlgmr.msra.gmra.mxu0 %vm790_vm3, %v1006_v46 }
 0x476   : > { %1413 = vmatprep.mubr.msk.f32.mxu0 %vm1471_vm1, %v1470_v5 }
 0x478   : > { %994 = vadd.xlane.f32.xlu0 %v993_v47 }
 0x4f9   : > { %v1004_v49 = vpop.xlane.xlu1 %1003 }
 0x4fa   : > { %1454 = vrcp.f32 %v1004_v49 }
 0x4fd   : > { %v1001_v50 = vpop.xlane.xlu0 %1000  ;;  %v998_v51 = vpop.xlane.xlu1 %997 }
 0x4fe   : > { %1456 = vrcp.f32 %v1001_v50 }
 0x4ff   : > { %1458 = vrcp.f32 %v998_v51 }
 0x501   : > { %v995_v52 = vpop.xlane.xlu0 %994 }
 0x502   : > { %1460 = vrcp.f32 %v995_v52 }
 0x507   : > { %v1455_v57 = vpop.eup %1454 }
 0x50b   : > { %v1457_v58 = vpop.eup %1456 }
 0x50c   : > { %v1459_v1 = vpop.eup %1458 }
 0x50f   : > { %v1461_v6 = vpop.eup %1460 }
 0x535   : > { %v1403_v53 = vpop.f32.mrf.mxu0 }
 0x536   : > { %v1073_v60 = vmul.f32 %v1457_v58, %v1403_v53 }
 0x537   : > { %v1052_v54 = vpop.f32.mrf.mxu0 }
 0x538   : > { %v1078_v7 = vmul.f32 %v1073_v60, %v1672_v62  ;;  %v1071_v8 = vmul.f32 %v1461_v6, %v1052_v54  ;;  %v1443_v62 = vld [vmem:[%s1738_s5] sm:$0xff]  }
 0x539   : > { %v1404_v59 = vpop.f32.mrf.mxu0  ;;  %1419 = vmatpush3.bf16.msra.mxu1 %v1443_v62 }
 0x53a   : > { %v1074_v63 = vmul.f32 %v1455_v57, %v1404_v59  ;;  %v1076_v10 = vmul.f32 %v1071_v8, %v1660_v56 }
 0x53b   : > { %v1055_v2 = vpop.f32.mrf.mxu0 }
 0x53c   : > { %v1079_v3 = vmul.f32 %v1074_v63, %v1667_v61  ;;  %v1072_v4 = vmul.f32 %v1459_v1, %v1055_v2  ;;  %v1075_v61 = vld [vmem:[%s1743_s10] sm:$0xff] }
 0x53e   : > { %1406 = vmatpush3.msra.mxu0 %v1079_v3  ;;  %v1077_v9 = vmul.f32 %v1072_v4, %v1655_v55 }
 0x53f   : > { %1407 = vmatprep.subr.mxu0 %v1470_v5 }
 0x540   : > { %1408 = vmatpush3.msra.mxu0 %v1078_v7 }
 0x541   : > { %1409 = vmatprep.subr.mxu0 %v1470_v5 }
 0x542   : > { %1410 = vmatpush3.msra.mxu0 %v1077_v9 }
 0x543   : > { %1411 = vmatprep.subr.mxu0 %v1470_v5 }
 0x544   : > { %1412 = vmatpush3.msra.mxu0 %v1076_v10 }
 0x545   : > { %1414 = vmatmul.mubr.msk.f32.vlgmr.msra.gmra.mxu0 %vm439_vm0, %v1075_v61 }
 0x605   : > { %v1149_v55 = vpop.f32.mrf.mxu0 }
 0x606   : > { %v1153_v11 = vpack.c.bf16 %v1149_v55, %v1149_v55 }
 0x607   : > { %v1415_v12 = vpop.f32.mrf.mxu0 }
 0x608   : > { %1421 = vmatmul.mubr.msk.bf16.vlgmr.msra.gmra.mxu1 %vm439_vm0, %v1153_v11 }
 0x6c8   : > { %v1207_v56 = vpop.f32.mrf.mxu1 }
 0x6c9   : > { %v1213_v5 = vadd.f32 %v1207_v56, %v1558_v0 }
 0x6ca   : > { %v1422_v13 = vpop.f32.mrf.mxu1 }
 0x6cb   : > { %1214 = vst.msk [vmem:[%s435_s16] sm:$0xff] %vm439_vm0, %v1213_v5 }
 0x6cc   : > { %v1210_v14 = vpop.f32.mrf.mxu1 }
 0x6ce   : > { %v1423_v15 = vpop.f32.mrf.mxu1 }
 0x6cf PF: > { %s23_s25 = sadd.s32 1, %s1468_s25  }
 0x6d0   : > { %p20_p4 = scmp.ge.s32.totalorder %s23_s25, 4  }
 0x6d2   :  { %22 = sbr.rel (!%p20_p4) target bundleno = 1 (0x1), region = 102 }

</bundles_post_ra>
